<compile_context>
chip_gen: v6e
topology: v6e:2x2x1
jax: 0.10.0
libtpu: 0.0.40
codegen_flags: <defaults>
</compile_context>

<pallas_src>
import jax
import jax.numpy as jnp
from jax.experimental import pallas as pl
from jax.experimental.pallas import tpu as pltpu


def s_from_eta_kernel(xa_ref, t_ref, w1_ref, w2_ref, b2_ref, o_ref):
    # xa: (TB, DP) = [x | t | 1 | 0-pad]  -> first matmul already includes
    # the time conditioning (t * Wt) and the first-layer bias b1.
    xa = xa_ref[...]                                                  # (TB, DP)
    t = t_ref[...]                                                    # (TB, 1)

    h = jnp.tanh(jnp.dot(xa, w1_ref[...],
                         preferred_element_type=jnp.float32))         # (TB, H)
    eta = jnp.dot(h, w2_ref[...],
                  preferred_element_type=jnp.float32) + b2_ref[...]   # (TB, DOUT)

    # 1 / gamma(t) = rsqrt(t * (1 - t)); clamp keeps interpolant endpoints finite.
    inv_gamma = jax.lax.rsqrt(jnp.maximum(t * (1.0 - t), 1e-12))      # (TB, 1)

    o_ref[...] = (eta * inv_gamma).astype(o_ref.dtype)


def s_from_eta(x, t, wx, wt, b1, w2, b2, *, tile_b=128):
    """Fused s(x,t) = eta(x,t) / gamma(t).  x: (B, D), t: (B, 1)."""
    B, D = x.shape
    H = wx.shape[1]
    out_dtype = x.dtype
    f32 = jnp.float32

    # Lane-dense padded feature dims (multiples of 128) and padded batch.
    d_in = D + 2                                  # [x, t, 1]
    DP = 128 * pl.cdiv(d_in, 128)
    DOUT = 128 * pl.cdiv(D, 128)
    TB = tile_b
    B_pad = TB * pl.cdiv(B, TB)

    # Pack the augmented input [x, t, 1] and zero-pad to (B_pad, DP).
    xa = jnp.concatenate(
        [x.astype(f32), t.astype(f32), jnp.ones((B, 1), f32)], axis=1)
    xa = jnp.pad(xa, ((0, B_pad - B), (0, DP - d_in)))
    tp = jnp.pad(t.astype(f32), ((0, B_pad - B), (0, 0)))

    # Stack W1 = [Wx; Wt; b1] (zero-padded rows); zero-pad W2 / b2 columns so
    # the output is lane-dense.  Done once per parameter set.
    w1 = jnp.pad(jnp.concatenate([wx, wt, b1], axis=0).astype(f32),
                 ((0, DP - d_in), (0, 0)))                       # (DP, H)
    w2p = jnp.pad(w2.astype(f32), ((0, 0), (0, DOUT - D)))       # (H, DOUT)
    b2p = jnp.pad(b2.astype(f32), ((0, 0), (0, DOUT - D)))       # (1, DOUT)

    out = pl.pallas_call(
        s_from_eta_kernel,
        out_shape=jax.ShapeDtypeStruct((B_pad, DOUT), out_dtype),
        grid=(B_pad // TB,),
        in_specs=[
            pl.BlockSpec((TB, DP), lambda i: (i, 0)),      # xa : streamed over B
            pl.BlockSpec((TB, 1), lambda i: (i, 0)),       # t  : streamed over B
            pl.BlockSpec((DP, H), lambda i: (0, 0)),       # W1 : VMEM-resident
            pl.BlockSpec((H, DOUT), lambda i: (0, 0)),     # W2 : VMEM-resident
            pl.BlockSpec((1, DOUT), lambda i: (0, 0)),     # b2 : VMEM-resident
        ],
        out_specs=pl.BlockSpec((TB, DOUT), lambda i: (i, 0)),
        compiler_params=pltpu.CompilerParams(
            # B rows are independent -> v7x shards the grid over its 2 TCs.
            dimension_semantics=("parallel",)),
    )(xa, tp, w1, w2p, b2p)

    return out[:B, :D]


def s_from_eta_ref(x, t, wx, wt, b1, w2, b2):
    h = jnp.tanh(x @ wx + t * wt + b1)
    eta = h @ w2 + b2
    gamma = jnp.sqrt(t * (1.0 - t))
    return eta / gamma


if __name__ == "__main__":
    # Batch sized so the MXU sees full 128-row tiles and the grid has >1 step.
    B, D, H = 256, 32, 128

    key = jax.random.PRNGKey(0)
    kx, kt, k1, k2, k3, k4, k5 = jax.random.split(key, 7)

    x = jax.random.normal(kx, (B, D), dtype=jnp.float32)
    # t in (0.1, 0.9) so gamma(t) is well away from zero.
    t = jax.random.uniform(kt, (B, 1), minval=0.1, maxval=0.9, dtype=jnp.float32)

    # Deterministic synthetic parameters for eta (2-layer MLP).
    wx = jax.random.normal(k1, (D, H), dtype=jnp.float32) * (1.0 / jnp.sqrt(D + 1))
    wt = jax.random.normal(k2, (1, H), dtype=jnp.float32) * (1.0 / jnp.sqrt(D + 1))
    b1 = jax.random.normal(k3, (1, H), dtype=jnp.float32) * 0.01
    w2 = jax.random.normal(k4, (H, D), dtype=jnp.float32) * (1.0 / jnp.sqrt(H))
    b2 = jax.random.normal(k5, (1, D), dtype=jnp.float32) * 0.01

    out = jax.block_until_ready(s_from_eta(x, t, wx, wt, b1, w2, b2, tile_b=128))
    ref = s_from_eta_ref(x, t, wx, wt, b1, w2, b2)

    assert out.shape == (B, D)
    assert jnp.allclose(out, ref, atol=1e-4, rtol=1e-4), "mismatch vs reference"
    print("KERNEL_OK")
</pallas_src>

<mosaic_0001>
module attributes {stable_mosaic.version = 11 : i64} {
  func.func @s_from_eta_kernel(%arg0: i32, %arg1: memref<128x128xf32, #tpu.memory_space<vmem>>, %arg2: memref<128x1xf32, #tpu.memory_space<vmem>>, %arg3: memref<128x128xf32, #tpu.memory_space<vmem>>, %arg4: memref<128x128xf32, #tpu.memory_space<vmem>>, %arg5: memref<1x128xf32, #tpu.memory_space<vmem>>, %arg6: memref<128x128xf32, #tpu.memory_space<vmem>>) attributes {dimension_semantics = [#tpu.dimension_semantics<parallel>], iteration_bounds = array<i64: 2>, scalar_prefetch = 0 : i64, scratch_operands = 0 : i64, tpu.core_type = #tpu.core_type<tc>, window_params = [{transform_indices = @transform_0, window_bounds = array<i64: 128, 128>}, {transform_indices = @transform_1, window_bounds = array<i64: 128, 1>}, {pipeline_mode = #tpu.pipeline_mode<synchronous>, transform_indices = @transform_2, window_bounds = array<i64: 128, 128>}, {pipeline_mode = #tpu.pipeline_mode<synchronous>, transform_indices = @transform_3, window_bounds = array<i64: 128, 128>}, {pipeline_mode = #tpu.pipeline_mode<synchronous>, transform_indices = @transform_4, window_bounds = array<i64: 1, 128>}, {transform_indices = @transform_5, window_bounds = array<i64: 128, 128>}]} {
    %c0 = arith.constant 0 : index
    %c0_0 = arith.constant 0 : index
    %0 = vector.load %arg1[%c0, %c0_0] : memref<128x128xf32, #tpu.memory_space<vmem>>, vector<128x128xf32>
    %c0_1 = arith.constant 0 : index
    %c0_2 = arith.constant 0 : index
    %1 = vector.load %arg2[%c0_1, %c0_2] : memref<128x1xf32, #tpu.memory_space<vmem>>, vector<128x1xf32>
    %c0_3 = arith.constant 0 : index
    %c0_4 = arith.constant 0 : index
    %2 = vector.load %arg3[%c0_3, %c0_4] : memref<128x128xf32, #tpu.memory_space<vmem>>, vector<128x128xf32>
    %cst = arith.constant dense<0.000000e+00> : vector<128x128xf32>
    %3 = tpu.matmul %0, %2, %cst {dimension_numbers = #tpu.dot_dimension_numbers<[1], [0], [0], [1], [0, 0, 1, 1], [], []>} : vector<128x128xf32>, vector<128x128xf32>, vector<128x128xf32> -> vector<128x128xf32>
    %4 = math.tanh %3 : vector<128x128xf32>
    %c0_5 = arith.constant 0 : index
    %c0_6 = arith.constant 0 : index
    %5 = vector.load %arg4[%c0_5, %c0_6] : memref<128x128xf32, #tpu.memory_space<vmem>>, vector<128x128xf32>
    %cst_7 = arith.constant dense<0.000000e+00> : vector<128x128xf32>
    %6 = tpu.matmul %4, %5, %cst_7 {dimension_numbers = #tpu.dot_dimension_numbers<[1], [0], [0], [1], [0, 0, 1, 1], [], []>} : vector<128x128xf32>, vector<128x128xf32>, vector<128x128xf32> -> vector<128x128xf32>
    %c0_8 = arith.constant 0 : index
    %c0_9 = arith.constant 0 : index
    %7 = vector.load %arg5[%c0_8, %c0_9] : memref<1x128xf32, #tpu.memory_space<vmem>>, vector<1x128xf32>
    %8 = vector.broadcast %7 : vector<1x128xf32> to vector<128x128xf32>
    %9 = arith.addf %6, %8 : vector<128x128xf32>
    %cst_10 = arith.constant 1.000000e+00 : f32
    %10 = vector.broadcast %cst_10 : f32 to vector<128x1xf32>
    %11 = arith.subf %10, %1 : vector<128x1xf32>
    %12 = arith.mulf %1, %11 : vector<128x1xf32>
    %cst_11 = arith.constant 9.99999996E-13 : f32
    %13 = vector.broadcast %cst_11 : f32 to vector<128x1xf32>
    %14 = arith.maximumf %12, %13 : vector<128x1xf32>
    %15 = math.rsqrt %14 : vector<128x1xf32>
    %16 = vector.broadcast %15 : vector<128x1xf32> to vector<128x128xf32>
    %17 = arith.mulf %9, %16 : vector<128x128xf32>
    %c0_12 = arith.constant 0 : index
    %c0_13 = arith.constant 0 : index
    %18 = vector.load %arg6[%c0_12, %c0_13] : memref<128x128xf32, #tpu.memory_space<vmem>>, vector<128x128xf32>
    tpu.vector_store %arg6[%c0_12, %c0_13], %17 {strides = array<i32>} : memref<128x128xf32, #tpu.memory_space<vmem>>, vector<128x128xf32>,
    return
  }
  func.func @transform_0(%arg0: i32) -> (i32, i32) {
    %c0_i32 = arith.constant 0 : i32
    %c0_i32_0 = arith.constant 0 : i32
    return %arg0, %c0_i32 : i32, i32
  }
  func.func @transform_1(%arg0: i32) -> (i32, i32) {
    %c0_i32 = arith.constant 0 : i32
    %c0_i32_0 = arith.constant 0 : i32
    return %arg0, %c0_i32 : i32, i32
  }
  func.func @transform_2(%arg0: i32) -> (i32, i32) {
    %c0_i32 = arith.constant 0 : i32
    %c0_i32_0 = arith.constant 0 : i32
    %c0_i32_1 = arith.constant 0 : i32
    return %c0_i32, %c0_i32_0 : i32, i32
  }
  func.func @transform_3(%arg0: i32) -> (i32, i32) {
    %c0_i32 = arith.constant 0 : i32
    %c0_i32_0 = arith.constant 0 : i32
    %c0_i32_1 = arith.constant 0 : i32
    return %c0_i32, %c0_i32_0 : i32, i32
  }
  func.func @transform_4(%arg0: i32) -> (i32, i32) {
    %c0_i32 = arith.constant 0 : i32
    %c0_i32_0 = arith.constant 0 : i32
    %c0_i32_1 = arith.constant 0 : i32
    return %c0_i32, %c0_i32_0 : i32, i32
  }
  func.func @transform_5(%arg0: i32) -> (i32, i32) {
    %c0_i32 = arith.constant 0 : i32
    %c0_i32_0 = arith.constant 0 : i32
    return %arg0, %c0_i32 : i32, i32
  }
}

</mosaic_0001>

<bundles_post_ra>
// kernel: tpu_custom_call.1
= control target key start
LH: loop header
LB: loop body
LE: loop exit
PB: predicated region body
PF: predicated region fallthrough
CT: control target
= control target key end

     0   :  { %10 = vsyncpa [#allocation3], 0  ;;  %s1660_s0 = inlined_call_operand.vmem [shape: f32[256,128], index: 0, kind: input, shape index: {}]   ;;  %s1661_s1 = inlined_call_operand.vmem [shape: f32[256,1], index: 1, kind: input, shape index: {}]   ;;  %s1662_s2 = inlined_call_operand.hbm [shape: f32[128,128], index: 2, kind: input, shape index: {}]   ;;  %s1663_s3 = inlined_call_operand.hbm [shape: f32[128,128], index: 3, kind: input, shape index: {}]   ;;  %s1664_s4 = inlined_call_operand.vmem [shape: f32[1,128], index: 4, kind: input, shape index: {}]   ;;  %s1665_s5 = inlined_call_operand.hbm [shape: f32[256,128], index: 5, kind: output, shape index: {}]  }
   0x1   :  { %11 = vsyncpa [#allocation6], 0 }
   0x2   :  { %12 = vsyncpa [#allocation4], 0 }
   0x3   :  { %14 = vsyncpa [#allocation4 + $0x1], 0  ;;  %s1428_s18 = smov 0   ;;  %s1430_s19 = smov 0  }
   0x4   :  { %s1432_s20 = smov 0   ;;  %s1434_s21 = smov 0  }
   0x5 LB: > { %s1449_s22 = sadd.s32 4294967295, %s1388_s21   ;;  %s941_s23 = sadd.s32 4294967294, %s1388_s21   ;;  %s1388_s21 = sphi %s1434_s21, %s1679_s21   ;;  %s1384_s20 = sphi %s1432_s20, %s1678_s20   ;;  %s1380_s19 = sphi %s1430_s19, %s1677_s19   ;;  %s1376_s18 = sphi %s1428_s18, %s1676_s18  }
   0x6   : > { %s1453_s24 = sadd.s32 1, %s1388_s21   ;;  %s142_s25 = sadd.s32 1, %s1384_s20 }
   0x7   : > { %s139_s26 = ssub.s32 %s1388_s21, %s1453_s24  ;;  %p152_p0 = scmp.ne.s32.totalorder %s1384_s20, %s1380_s19 }
   0x8   : > { %p140_p1 = scmp.eq.s32.totalorder %s139_s26, 0  ;;  %p153_p2 = scmp.eq.s32.totalorder %s1449_s22, 1 }
   0x9   : > { %p158_p3 = scmp.ne.s32.totalorder %s1380_s19, %s1376_s18  ;;  %p159_p4 = scmp.eq.s32.totalorder %s941_s23, 1 }
   0xa   : > { %s1464_s27 = scalar_select %p140_p1, %s1384_s20, %s142_s25  }
   0xb   : > { %p1466_p5 = por %p153_p2, %p152_p0  ;;  %p1470_p6 = por %p159_p4, %p158_p3 }
   0xc   : > { %p942_p7 = scmp.ge.s32.totalorder %s1388_s21, 1  ;;  %p166_p8 = scmp.lt.s32.totalorder %s1388_s21, 3 }
   0xd   : > { %s1668_s29 = scalar_select %p1470_p6, 1, 0 }
   0xe   : > { %p1666_p9 = scmp.eq.s32.totalorder %s1449_s22, 0  ;;  %p1477_p10 = pnand %p942_p7, %p166_p8 }
   0xf   : > { %s1390_s6 = smov [#allocation2]   ;;  %s1391_s9 = smov [#allocation5]  }
  0x10   : > { %s178_s7 = sshll.u32 %s1390_s6, 4  ;;  %p1147_p11 = pneg %p1477_p10  ;;  %s179_s7 = int_to_ptr.vmem [resolvable:$true] %s178_s7 }
  0x11   : > { %s191_s10 = sshll.u32 %s1391_s9, 4  ;;  %s1279_s11 = scalar_lea.vmem %s179_s7, 2048  ;;  %s192_s10 = int_to_ptr.vmem [resolvable:$true] %s191_s10 }
  0x12   : > { %p1485_p12 = pnand %p1666_p9, %p1147_p11  ;;  %p1280_p0 = scmp.ne.s32.totalorder %s179_s7, %s1279_s11 }
  0x13   : > { %p1287_p3 = scmp.lt.s32.totalorder %s179_s7, %s179_s7  ;;  %p1288_p4 = scmp.lt.s32.totalorder %s1279_s11, %s1279_s11 }
  0x14   : > { %p1270_p13 = pneg %p1485_p12 }
  0x15   : > { %p1289_p7 = por %p1288_p4, %p1287_p3 }
  0x16   : > { %p1282_p1 = pnand %p1280_p0, %p1270_p13 }
  0x18   : > { %p1283_p2 = pneg %p1282_p1 }
  0x1a   : > { %p1290_p8 = pnand %p1289_p7, %p1283_p2 }
  0x1c   : > { %1293 = shalt.err (!%p1290_p8)
}
  0x1d   : > { %s1392_s12 = smov 128   ;;  %s1393_s13 = smov 8  }
  0x1e   : > { %1150 = dma.hbm_to_vmem [thread:$0]  (!%p1485_p12), %s1662_s2, 2048, %s179_s7, [#allocation3], %s1392_s12, %s1392_s12, %s1393_s13  }
  0x1f   : > { %s1305_s16 = scalar_lea.vmem %s192_s10, 2048  ;;  %p1313_p9 = scmp.lt.s32.totalorder %s192_s10, %s192_s10 }
  0x20   : > { %p1306_p11 = scmp.ne.s32.totalorder %s192_s10, %s1305_s16  ;;  %p1314_p6 = scmp.lt.s32.totalorder %s1305_s16, %s1305_s16 }
  0x22   : > { %p1308_p0 = pnand %p1306_p11, %p1270_p13  ;;  %p1315_p3 = por %p1314_p6, %p1313_p9 }
  0x24   : > { %p1309_p1 = pneg %p1308_p0 }
  0x26   : > { %p1316_p2 = pnand %p1315_p3, %p1309_p1 }
  0x28   : > { %1319 = shalt.err (!%p1316_p2)
}
  0x29   : > { %1153 = dma.hbm_to_vmem [thread:$0]  (!%p1485_p12), %s1663_s3, 2048, %s192_s10, [#allocation6], %s1392_s12, %s1392_s12, %s1393_s13  }
  0x2a   : > { %228 = sbr.rel (%p1477_p10) target bundleno = 535 (0x217), region = 40  ;;  %p1671_p4 = scmp.eq.s32.totalorder (!%p1477_p10), %s1449_s22, 0 }
  0x2f   : > { %1363 = dma.done.wait (%p1671_p4), [#allocation3], 2048   ;;  %p1672_p13 = pmov %p1671_p4 }
  0x30   : > { %p1673_p7 = pmov %p1671_p4 }
  0x31   : > { %1365 = vsyncadd (%p1672_p13), [#allocation3], 4294965248 }
  0x32   : > { %1367 = dma.done.wait (%p1673_p7), [#allocation6], 2048   ;;  %p1674_p6 = pmov %p1671_p4 }
  0x33   : > { %s950_s25 = sshll.u32 %s1449_s22, 4  ;;  %v325_v0 = vld [vmem:[#allocation2 + $0x78] sm:$0xff]  ;;  %v324_v1 = vld [vmem:[#allocation2 + $0x70] sm:$0xff]  ;;  %v323_v2 = vld [vmem:[#allocation2 + $0x68] sm:$0xff]  ;;  %v1394_v57 = vmov 0   ;;  %s262_s11 = sand.u32 1, %s1380_s19  }
  0x34   : > { %1369 = vsyncadd (%p1674_p6), [#allocation6], 4294965248  ;;  %p266_p9 = scmp.lt.s32.totalorder %s950_s25, 31  ;;  %1025 = vmatprep.subr.mxu0 %v325_v0  ;;  %v322_v3 = vld [vmem:[#allocation2 + $0x60] sm:$0xff]  ;;  %v321_v5 = vld [vmem:[#allocation2 + $0x58] sm:$0xff]  ;;  %1203 = vset.pattern.permute.xlu1 %v1394_v57  ;;  %s949_s14 = sshll.u32 %s262_s11, 7 }
  0x35   : > { %1026 = vmatpush3.msra.mxu0 %v325_v0  ;;  %v320_v6 = vld [vmem:[#allocation2 + $0x50] sm:$0xff]  ;;  %v319_v7 = vld [vmem:[#allocation2 + $0x48] sm:$0xff]  ;;  %v502_v8 = vld [vmem:[#allocation5 + $0x78] sm:$0xff]  ;;  %1202 = vset.pattern.permute.xlu0 %v1394_v57  ;;  %s1577_s15 = scalar_lea.vmem [#allocation7], %s949_s14  ;;  %s960_s16 = sshll.u32 %s1449_s22, 11 }
  0x36   : > { %s1681_s25 = smov (!%p266_p9, %s950_s25), 31  ;;  %1027 = vmatprep.subr.mxu0 %v324_v1  ;;  %1081 = vmatprep.subr.mxu1 %v502_v8  ;;  %v501_v9 = vld [vmem:[#allocation5 + $0x70] sm:$0xff]  ;;  %v318_v10 = vld [vmem:[#allocation2 + $0x40] sm:$0xff]  ;;  %v500_v11 = vld [vmem:[#allocation5 + $0x68] sm:$0xff]  ;;  %s845_s17 = sshll.u32 %s1577_s15, 4  ;;  %s1614_s17 = int_to_ptr.vmem [resolvable:$true] %s845_s17 }
  0x37   : > { %s951_s26 = sshll.u32 %s1681_s25, 3  ;;  %1028 = vmatpush3.msra.mxu0 %v324_v1  ;;  %1082 = vmatpush3.msra.mxu1 %v502_v8  ;;  %v317_v12 = vld [vmem:[#allocation2 + $0x38] sm:$0xff]  ;;  %v499_v13 = vld [vmem:[#allocation5 + $0x60] sm:$0xff]  ;;  %v316_v14 = vld [vmem:[#allocation2 + $0x30] sm:$0xff]  ;;  %s1620_s22 = scalar_lea.sflag [#allocation4], %s262_s11 }
  0x38   : > { %s1526_s7 = scalar_lea.vmem %s1660_s0, %s951_s26  ;;  %1029 = vmatprep.subr.mxu0 %v323_v2  ;;  %1083 = vmatprep.subr.mxu1 %v501_v9  ;;  %v498_v15 = vld [vmem:[#allocation5 + $0x58] sm:$0xff]  ;;  %v315_v16 = vld [vmem:[#allocation2 + $0x28] sm:$0xff]  ;;  %v497_v17 = vld [vmem:[#allocation5 + $0x50] sm:$0xff]  ;;  %s1549_s10 = scalar_lea.vmem %s1661_s1, %s951_s26 }
  0x39   : > { %v278_v4 = vld [vmem:[%s1526_s7] sm:$0xff]  ;;  %1030 = vmatpush3.msra.mxu0 %v323_v2  ;;  %1084 = vmatpush3.msra.mxu1 %v501_v9  ;;  %v496_v19 = vld [vmem:[#allocation5 + $0x48] sm:$0xff]  ;;  %v313_v20 = vld [vmem:[#allocation2 + $0x18] sm:$0xff]  ;;  %s1612_s26 = scalar_lea.hbm %s1665_s5, %s960_s16  ;;  %s1320_s30 = scalar_lea.vmem %s1614_s17, 2048 }
  0x3a   : > { %1057 = vmatprep.mubr.f32.mxu0 %v278_v4  ;;  %1031 = vmatprep.subr.mxu0 %v322_v3  ;;  %v314_v18 = vld [vmem:[#allocation2 + $0x20] sm:$0xff]  ;;  %v312_v21 = vld [vmem:[#allocation2 + $0x10] sm:$0xff]  ;;  %v311_v22 = vld [vmem:[#allocation2 + $0x8] sm:$0xff]  ;;  %p1321_p10 = scmp.ne.s32.totalorder %s1614_s17, %s1320_s30  ;;  %s1395_s6 = smov [#allocation7]  }
  0x3b   : > { %1032 = vmatpush3.msra.mxu0 %v322_v3  ;;  %1085 = vmatprep.subr.mxu1 %v500_v11  ;;  %v310_v23 = vld [vmem:[#allocation2] sm:$0xff]  ;;  %v279_v24 = vld [vmem:[%s1526_s7 + $0x8] sm:$0xff]  ;;  %v280_v25 = vld [vmem:[%s1526_s7 + $0x10] sm:$0xff] }
  0x3c   : > { %1033 = vmatprep.subr.mxu0 %v321_v5  ;;  %1086 = vmatpush3.msra.mxu1 %v500_v11  ;;  %v281_v26 = vld [vmem:[%s1526_s7 + $0x18] sm:$0xff]  ;;  %v282_v27 = vld [vmem:[%s1526_s7 + $0x20] sm:$0xff]  ;;  %v283_v28 = vld [vmem:[%s1526_s7 + $0x28] sm:$0xff]  ;;  %p1322_p12 = pnand %p1321_p10, %p1466_p5 }
  0x3d   : > { %1034 = vmatpush3.msra.mxu0 %v321_v5  ;;  %1087 = vmatprep.subr.mxu1 %v499_v13  ;;  %v284_v29 = vld [vmem:[%s1526_s7 + $0x30] sm:$0xff]  ;;  %v285_v30 = vld [vmem:[%s1526_s7 + $0x38] sm:$0xff]  ;;  %v286_v31 = vld [vmem:[%s1526_s7 + $0x40] sm:$0xff] }
  0x3e   : > { %1035 = vmatprep.subr.mxu0 %v320_v6  ;;  %1088 = vmatpush3.msra.mxu1 %v499_v13  ;;  %v287_v32 = vld [vmem:[%s1526_s7 + $0x48] sm:$0xff]  ;;  %v288_v33 = vld [vmem:[%s1526_s7 + $0x50] sm:$0xff]  ;;  %v289_v34 = vld [vmem:[%s1526_s7 + $0x58] sm:$0xff]  ;;  %p1323_p8 = pneg %p1322_p12 }
  0x3f   : > { %1036 = vmatpush3.msra.mxu0 %v320_v6  ;;  %1089 = vmatprep.subr.mxu1 %v498_v15  ;;  %v290_v35 = vld [vmem:[%s1526_s7 + $0x60] sm:$0xff]  ;;  %v291_v36 = vld [vmem:[%s1526_s7 + $0x68] sm:$0xff]  ;;  %v292_v37 = vld [vmem:[%s1526_s7 + $0x70] sm:$0xff] }
  0x40   : > { %1037 = vmatprep.subr.mxu0 %v319_v7  ;;  %1090 = vmatpush3.msra.mxu1 %v498_v15  ;;  %v293_v38 = vld [vmem:[%s1526_s7 + $0x78] sm:$0xff]  ;;  %v495_v39 = vld [vmem:[#allocation5 + $0x40] sm:$0xff]  ;;  %v493_v41 = vld [vmem:[#allocation5 + $0x30] sm:$0xff]  ;;  %s1324_s7 = sshll.u32 %s1395_s6, 4  ;;  %s1325_s7 = int_to_ptr.vmem [resolvable:$false] %s1324_s7 }
  0x41   : > { %1038 = vmatpush3.msra.mxu0 %v319_v7  ;;  %1091 = vmatprep.subr.mxu1 %v497_v17  ;;  %v494_v40 = vld [vmem:[#allocation5 + $0x38] sm:$0xff]  ;;  %v492_v42 = vld [vmem:[#allocation5 + $0x28] sm:$0xff]  ;;  %v491_v43 = vld [vmem:[#allocation5 + $0x20] sm:$0xff]  ;;  %s1326_s8 = scalar_lea.vmem %s1325_s7, 4096  ;;  %p1327_p11 = scmp.lt.s32.totalorder %s1614_s17, %s1325_s7 }
  0x42   : > { %1039 = vmatprep.subr.mxu0 %v318_v10  ;;  %1092 = vmatpush3.msra.mxu1 %v497_v17  ;;  %v490_v44 = vld [vmem:[#allocation5 + $0x18] sm:$0xff]  ;;  %v489_v45 = vld [vmem:[#allocation5 + $0x10] sm:$0xff]  ;;  %v488_v46 = vld [vmem:[#allocation5 + $0x8] sm:$0xff]  ;;  %p1328_p0 = scmp.lt.s32.totalorder %s1326_s8, %s1320_s30 }
  0x43   : > { %1040 = vmatpush3.msra.mxu0 %v318_v10  ;;  %1093 = vmatprep.subr.mxu1 %v496_v19  ;;  %v487_v47 = vld [vmem:[#allocation5] sm:$0xff]  ;;  %v296_v48 = vld [vmem:[%s1549_s10 + $0x10] sm:$0xff]  ;;  %v297_v54 = vld [vmem:[%s1549_s10 + $0x18] sm:$0xff] }
  0x44   : > { %1041 = vmatprep.subr.mxu0 %v317_v12  ;;  %1094 = vmatpush3.msra.mxu1 %v496_v19  ;;  %v294_v49 = vld [vmem:[%s1549_s10] sm:$0xff]  ;;  %v657_v50 = vsub.f32 1.0, %v296_v48  ;;  %v295_v55 = vld [vmem:[%s1549_s10 + $0x8] sm:$0xff]  ;;  %v658_v60 = vsub.f32 1.0, %v297_v54  ;;  %v301_v0 = vld [vmem:[%s1549_s10 + $0x38] sm:$0xff]  ;;  %p1329_p1 = por %p1328_p0, %p1327_p11 }
  0x45   : > { %1042 = vmatpush3.msra.mxu0 %v317_v12  ;;  %1095 = vmatprep.subr.mxu1 %v495_v39  ;;  %v655_v51 = vsub.f32 1.0, %v294_v49  ;;  %v299_v56 = vld [vmem:[%s1549_s10 + $0x28] sm:$0xff]  ;;  %v656_v61 = vsub.f32 1.0, %v295_v55  ;;  %v298_v63 = vld [vmem:[%s1549_s10 + $0x20] sm:$0xff]  ;;  %v300_v1 = vld [vmem:[%s1549_s10 + $0x30] sm:$0xff]  ;;  %v662_v8 = vsub.f32 1.0, %v301_v0 }
  0x46   : > { %1043 = vmatprep.subr.mxu0 %v316_v14  ;;  %1096 = vmatpush3.msra.mxu1 %v495_v39  ;;  %v673_v52 = vmul.f32 %v657_v50, %v296_v48  ;;  %v660_v62 = vsub.f32 1.0, %v299_v56  ;;  %v674_v2 = vmul.f32 %v658_v60, %v297_v54  ;;  %v659_v4 = vsub.f32 1.0, %v298_v63  ;;  %v303_v5 = vld [vmem:[%s1549_s10 + $0x48] sm:$0xff]  ;;  %v302_v6 = vld [vmem:[%s1549_s10 + $0x40] sm:$0xff]  ;;  %p1330_p3 = pnand %p1329_p1, %p1323_p8 }
  0x47   : > { %1044 = vmatpush3.msra.mxu0 %v316_v14  ;;  %1097 = vmatprep.subr.mxu1 %v494_v40  ;;  %v671_v53 = vmul.f32 %v655_v51, %v294_v49  ;;  %v672_v3 = vmul.f32 %v656_v61, %v295_v55  ;;  %v661_v9 = vsub.f32 1.0, %v300_v1  ;;  %v664_v13 = vsub.f32 1.0, %v303_v5 }
  0x48   : > { %1045 = vmatprep.subr.mxu0 %v315_v16  ;;  %1098 = vmatpush3.msra.mxu1 %v494_v40  ;;  %v689_v58 = vmax.f32 %v673_v52, 1e-12  ;;  %v676_v7 = vmul.f32 %v660_v62, %v299_v56  ;;  %v690_v10 = vmax.f32 %v674_v2, 1e-12  ;;  %v675_v12 = vmul.f32 %v659_v4, %v298_v63 }
  0x49   : > { %1046 = vmatpush3.msra.mxu0 %v315_v16  ;;  %1099 = vmatprep.subr.mxu1 %v493_v41  ;;  %v687_v59 = vmax.f32 %v671_v53, 1e-12  ;;  %v688_v11 = vmax.f32 %v672_v3, 1e-12  ;;  %v678_v15 = vmul.f32 %v662_v8, %v301_v0  ;;  %v677_v16 = vmul.f32 %v661_v9, %v300_v1 }
  0x4a   : > { %1047 = vmatprep.subr.mxu0 %v314_v18  ;;  %1100 = vmatpush3.msra.mxu1 %v493_v41  ;;  %1204 = vrsqrt.f32 %v689_v58  ;;  %v692_v14 = vmax.f32 %v676_v7, 1e-12  ;;  %v663_v17 = vsub.f32 1.0, %v302_v6  ;;  %v691_v19 = vmax.f32 %v675_v12, 1e-12 }
  0x4b   : > { %1048 = vmatpush3.msra.mxu0 %v314_v18  ;;  %1101 = vmatprep.subr.mxu1 %v492_v42  ;;  %1206 = vrsqrt.f32 %v687_v59  ;;  %v305_v18 = vld [vmem:[%s1549_s10 + $0x58] sm:$0xff] }
  0x4c   : > { %1049 = vmatprep.subr.mxu0 %v313_v20  ;;  %1102 = vmatpush3.msra.mxu1 %v492_v42  ;;  %1208 = vrsqrt.f32 %v690_v10 }
  0x4d   : > { %1050 = vmatpush3.msra.mxu0 %v313_v20  ;;  %1103 = vmatprep.subr.mxu1 %v491_v43  ;;  %v304_v20 = vld [vmem:[%s1549_s10 + $0x50] sm:$0xff]  ;;  %1210 = vrsqrt.f32 %v688_v11 }
  0x4e   : > { %1051 = vmatprep.subr.mxu0 %v312_v21  ;;  %1104 = vmatpush3.msra.mxu1 %v491_v43  ;;  %1212 = vrsqrt.f32 %v692_v14 }
  0x4f   : > { %1052 = vmatpush3.msra.mxu0 %v312_v21  ;;  %1105 = vmatprep.subr.mxu1 %v490_v44  ;;  %v694_v21 = vmax.f32 %v678_v15, 1e-12  ;;  %1214 = vrsqrt.f32 %v691_v19 }
  0x50   : > { %1053 = vmatprep.subr.mxu0 %v311_v22  ;;  %1106 = vmatpush3.msra.mxu1 %v490_v44 }
  0x51   : > { %1054 = vmatpush3.msra.mxu0 %v311_v22  ;;  %1107 = vmatprep.subr.mxu1 %v489_v45  ;;  %v680_v22 = vmul.f32 %v664_v13, %v303_v5  ;;  %1216 = vrsqrt.f32 %v694_v21 }
  0x52   : > { %1055 = vmatprep.subr.mxu0 %v310_v23  ;;  %1108 = vmatpush3.msra.mxu1 %v489_v45 }
  0x53   : > { %1056 = vmatpush3.msra.mxu0 %v310_v23  ;;  %1109 = vmatprep.subr.mxu1 %v488_v46  ;;  %v666_v23 = vsub.f32 1.0, %v305_v18 }
  0x54   : > { %1058 = vmatmul.mubr.f32.vlgmr.msra.gmra.mxu0 %v279_v24  ;;  %1110 = vmatpush3.msra.mxu1 %v488_v46  ;;  %v693_v24 = vmax.f32 %v677_v16, 1e-12 }
  0x55   : > { %1060 = vmatprep.mubr.f32.mxu0 %v280_v25  ;;  %1111 = vmatprep.subr.mxu1 %v487_v47  ;;  %v679_v25 = vmul.f32 %v663_v17, %v302_v6 }
  0x56   : > { %1112 = vmatpush3.msra.mxu1 %v487_v47  ;;  %1218 = vrsqrt.f32 %v693_v24 }
  0x58   : > { %1061 = vmatmul.mubr.f32.gmra.mxu0 %v281_v26  ;;  %v665_v26 = vsub.f32 1.0, %v304_v20 }
  0x59   : > { %1063 = vmatprep.mubr.f32.mxu0 %v282_v27  ;;  %v307_v27 = vld [vmem:[%s1549_s10 + $0x68] sm:$0xff] }
  0x5c   : > { %1064 = vmatmul.mubr.f32.gmra.mxu0 %v283_v28  ;;  %v306_v28 = vld [vmem:[%s1549_s10 + $0x60] sm:$0xff] }
  0x5d   : > { %1066 = vmatprep.mubr.f32.mxu0 %v284_v29  ;;  %v696_v29 = vmax.f32 %v680_v22, 1e-12 }
  0x5f   : > { %1220 = vrsqrt.f32 %v696_v29 }
  0x60   : > { %1067 = vmatmul.mubr.f32.gmra.mxu0 %v285_v30  ;;  %v682_v30 = vmul.f32 %v666_v23, %v305_v18 }
  0x61   : > { %1069 = vmatprep.mubr.f32.mxu0 %v286_v31  ;;  %v668_v31 = vsub.f32 1.0, %v307_v27 }
  0x62   : > { %v698_v39 = vmax.f32 %v682_v30, 1e-12 }
  0x63   : > { %v684_v40 = vmul.f32 %v668_v31, %v307_v27 }
  0x64   : > { %1070 = vmatmul.mubr.f32.gmra.mxu0 %v287_v32  ;;  %v695_v32 = vmax.f32 %v679_v25, 1e-12 }
  0x65   : > { %1072 = vmatprep.mubr.f32.mxu0 %v288_v33  ;;  %v681_v33 = vmul.f32 %v665_v26, %v304_v20  ;;  %v700_v47 = vmax.f32 %v684_v40, 1e-12 }
  0x66   : > { %1222 = vrsqrt.f32 %v695_v32 }
  0x67   : > { %v697_v42 = vmax.f32 %v681_v33, 1e-12  ;;  %1224 = vrsqrt.f32 %v698_v39 }
  0x68   : > { %1073 = vmatmul.mubr.f32.gmra.mxu0 %v289_v34  ;;  %v667_v34 = vsub.f32 1.0, %v306_v28 }
  0x69   : > { %1075 = vmatprep.mubr.f32.mxu0 %v290_v35  ;;  %v309_v35 = vld [vmem:[%s1549_s10 + $0x78] sm:$0xff]  ;;  %1226 = vrsqrt.f32 %v697_v42 }
  0x6a   : > { %v670_v41 = vsub.f32 1.0, %v309_v35  ;;  %v683_v43 = vmul.f32 %v667_v34, %v306_v28  ;;  %1228 = vrsqrt.f32 %v700_v47 }
  0x6c   : > { %1076 = vmatmul.mubr.f32.gmra.mxu0 %v291_v36  ;;  %v308_v36 = vld [vmem:[%s1549_s10 + $0x70] sm:$0xff]  ;;  %v686_v48 = vmul.f32 %v670_v41, %v309_v35  ;;  %v699_v50 = vmax.f32 %v683_v43, 1e-12 }
  0x6d   : > { %1078 = vmatprep.mubr.f32.mxu0 %v292_v37  ;;  %v1205_v37 = vpop.eup %1204  ;;  %v669_v44 = vsub.f32 1.0, %v308_v36 }
  0x6e   : > { %731 = vperm.xlu1 %1203, %v1205_v37   ;;  %v702_v53 = vmax.f32 %v686_v48, 1e-12  ;;  %1230 = vrsqrt.f32 %v699_v50  ;;  %v1571_v37 = vld [vmem:[%s1664_s4] ss:$0 sm:$0xff] }
  0x6f   : > { %v685_v51 = vmul.f32 %v669_v44, %v308_v36 }
  0x70   : > { %1079 = vmatmul.mubr.f32.gmra.mxu0 %v293_v38  ;;  %v1207_v38 = vpop.eup %1206  ;;  %1232 = vrsqrt.f32 %v702_v53 }
  0x71   : > { %721 = vperm.xlu0 %1202, %v1207_v38   ;;  %v1209_v45 = vpop.eup %1208  ;;  %v701_v55 = vmax.f32 %v685_v51, 1e-12 }
  0x72   : > { %v1211_v46 = vpop.eup %1210  ;;  %736 = vperm.xlu1 %1203, %v1209_v45  }
  0x73   : > { %v1213_v49 = vpop.eup %1212  ;;  %1234 = vrsqrt.f32 %v701_v55 }
  0x74   : > { %v1215_v52 = vpop.eup %1214 }
  0x75   : > { %726 = vperm.xlu0 %1202, %v1211_v46   ;;  %v1217_v54 = vpop.eup %1216 }
  0x76   : > { %746 = vperm.xlu1 %1203, %v1213_v49   ;;  %v1219_v56 = vpop.eup %1218 }
  0x77   : > { %v1221_v57 = vpop.eup %1220 }
  0x78   : > { %v1223_v58 = vpop.eup %1222 }
  0x79   : > { %741 = vperm.xlu0 %1202, %v1215_v52   ;;  %v1225_v59 = vpop.eup %1224 }
  0x7a   : > { %756 = vperm.xlu1 %1203, %v1217_v54   ;;  %v1227_v60 = vpop.eup %1226 }
  0x7b   : > { %v1229_v61 = vpop.eup %1228 }
  0x7c   : > { %v1231_v62 = vpop.eup %1230 }
  0x7d   : > { %751 = vperm.xlu0 %1202, %v1219_v56   ;;  %v1233_v63 = vpop.eup %1232 }
  0x7e   : > { %766 = vperm.xlu1 %1203, %v1221_v57  }
  0x80   : > { %v1235_v0 = vpop.eup %1234 }
  0x81   : > { %761 = vperm.xlu0 %1202, %v1223_v58  }
  0x82   : > { %776 = vperm.xlu1 %1203, %v1225_v59  }
  0x85   : > { %771 = vperm.xlu0 %1202, %v1227_v60  }
  0x86   : > { %786 = vperm.xlu1 %1203, %v1229_v61  }
  0x89   : > { %781 = vperm.xlu0 %1202, %v1231_v62  }
  0x8a   : > { %796 = vperm.xlu1 %1203, %v1233_v63  }
  0x8d   : > { %791 = vperm.xlu0 %1202, %v1235_v0  }
  0xe9   : > { %v732_v33 = vpop.permute.xlu1 %731 }
  0xec   : > { %v722_v34 = vpop.permute.xlu0 %721 }
  0xed   : > { %v737_v35 = vpop.permute.xlu1 %736 }
  0xf0   : > { %v727_v36 = vpop.permute.xlu0 %726 }
  0xf1   : > { %v747_v38 = vpop.permute.xlu1 %746 }
  0xf4   : > { %v742_v41 = vpop.permute.xlu0 %741 }
  0xf5   : > { %v757_v48 = vpop.permute.xlu1 %756 }
  0xf8   : > { %v752_v52 = vpop.permute.xlu0 %751 }
  0xf9   : > { %v767_v59 = vpop.permute.xlu1 %766 }
  0xfc   : > { %v762_v63 = vpop.permute.xlu0 %761 }
 0x114   : > { %v1059_v1 = vpop.f32.mrf.mxu0 }
 0x116   : > { %v392_v2 = vpop.f32.mrf.mxu0 }
 0x117   : > { %1236 = vtanh.f32 %v392_v2 }
 0x118   : > { %1238 = vtanh.f32 %v1059_v1  ;;  %v1062_v3 = vpop.f32.mrf.mxu0 }
 0x11a   : > { %v402_v4 = vpop.f32.mrf.mxu0 }
 0x11b   : > { %1240 = vtanh.f32 %v402_v4 }
 0x11c   : > { %1242 = vtanh.f32 %v1062_v3  ;;  %v1065_v5 = vpop.f32.mrf.mxu0 }
 0x11e   : > { %v412_v6 = vpop.f32.mrf.mxu0 }
 0x11f   : > { %1244 = vtanh.f32 %v412_v6  ;;  %v777_v6 = vpop.permute.xlu1 %776 }
 0x120   : > { %1246 = vtanh.f32 %v1065_v5  ;;  %v1068_v7 = vpop.f32.mrf.mxu0 }
 0x122   : > { %v422_v8 = vpop.f32.mrf.mxu0 }
 0x123   : > { %1248 = vtanh.f32 %v422_v8 }
 0x124   : > { %v1237_v9 = vpop.eup %1236  ;;  %1250 = vtanh.f32 %v1068_v7  ;;  %v1071_v10 = vpop.f32.mrf.mxu0 }
 0x125   : > { %v1239_v11 = vpop.eup %1238  ;;  %1113 = vmatprep.mubr.f32.mxu1 %v1237_v9 }
 0x126   : > { %v432_v12 = vpop.f32.mrf.mxu0  ;;  %1114 = vmatmul.mubr.f32.vlgmr.msra.gmra.mxu1 %v1239_v11 }
 0x127   : > { %1252 = vtanh.f32 %v432_v12 }
 0x128   : > { %v1241_v13 = vpop.eup %1240  ;;  %1254 = vtanh.f32 %v1071_v10  ;;  %v1074_v14 = vpop.f32.mrf.mxu0 }
 0x129   : > { %v1243_v15 = vpop.eup %1242  ;;  %1116 = vmatprep.mubr.f32.mxu1 %v1241_v13  ;;  %v772_v10 = vpop.permute.xlu0 %771 }
 0x12a   : > { %v442_v16 = vpop.f32.mrf.mxu0  ;;  %1117 = vmatmul.mubr.f32.gmra.mxu1 %v1243_v15 }
 0x12b   : > { %1256 = vtanh.f32 %v442_v16 }
 0x12c   : > { %v1245_v17 = vpop.eup %1244  ;;  %1258 = vtanh.f32 %v1074_v14  ;;  %v1077_v18 = vpop.f32.mrf.mxu0 }
 0x12d   : > { %v1247_v19 = vpop.eup %1246  ;;  %1119 = vmatprep.mubr.f32.mxu1 %v1245_v17  ;;  %v787_v17 = vpop.permute.xlu1 %786 }
 0x12e   : > { %v452_v20 = vpop.f32.mrf.mxu0  ;;  %1120 = vmatmul.mubr.f32.gmra.mxu1 %v1247_v19 }
 0x12f   : > { %1260 = vtanh.f32 %v452_v20 }
 0x130   : > { %v1249_v21 = vpop.eup %1248  ;;  %1262 = vtanh.f32 %v1077_v18  ;;  %v1080_v22 = vpop.f32.mrf.mxu0 }
 0x131   : > { %v1251_v23 = vpop.eup %1250  ;;  %1122 = vmatprep.mubr.f32.mxu1 %v1249_v21  ;;  %v782_v21 = vpop.permute.xlu0 %781 }
 0x132   : > { %v462_v24 = vpop.f32.mrf.mxu0  ;;  %1123 = vmatmul.mubr.f32.gmra.mxu1 %v1251_v23 }
 0x133   : > { %1264 = vtanh.f32 %v462_v24 }
 0x134   : > { %v1253_v25 = vpop.eup %1252  ;;  %1266 = vtanh.f32 %v1080_v22 }
 0x135   : > { %v1255_v26 = vpop.eup %1254  ;;  %1125 = vmatprep.mubr.f32.mxu1 %v1253_v25 }
 0x136   : > { %1126 = vmatmul.mubr.f32.gmra.mxu1 %v1255_v26 }
 0x138   : > { %v1257_v27 = vpop.eup %1256 }
 0x139   : > { %v1259_v28 = vpop.eup %1258  ;;  %1128 = vmatprep.mubr.f32.mxu1 %v1257_v27 }
 0x13a   : > { %1129 = vmatmul.mubr.f32.gmra.mxu1 %v1259_v28  ;;  %v797_v28 = vpop.permute.xlu1 %796 }
 0x13c   : > { %v1261_v29 = vpop.eup %1260 }
 0x13d   : > { %v1263_v30 = vpop.eup %1262  ;;  %1131 = vmatprep.mubr.f32.mxu1 %v1261_v29 }
 0x13e   : > { %1132 = vmatmul.mubr.f32.gmra.mxu1 %v1263_v30 }
 0x140   : > { %v1265_v31 = vpop.eup %1264 }
 0x141   : > { %v1267_v32 = vpop.eup %1266  ;;  %1134 = vmatprep.mubr.f32.mxu1 %v1265_v31 }
 0x142   : > { %1135 = vmatmul.mubr.f32.gmra.mxu1 %v1267_v32  ;;  %v792_v32 = vpop.permute.xlu0 %791 }
 0x1e6   : > { %v1115_v39 = vpop.f32.mrf.mxu1 }
 0x1e7   : > { %v582_v40 = vadd.f32 %v1115_v39, %v1571_v37 }
 0x1e8   : > { %v576_v42 = vpop.f32.mrf.mxu1 }
 0x1e9   : > { %v800_v43 = vmul.f32 %v727_v36, %v582_v40  ;;  %v577_v44 = vadd.f32 %v1571_v37, %v576_v42 }
 0x1ea   : > { %v1118_v45 = vpop.f32.mrf.mxu1 }
 0x1eb   : > { %816 = vst [vmem:[%s1577_s15 + $0x8] sm:$0xff] %v800_v43  ;;  %v799_v46 = vmul.f32 %v722_v34, %v577_v44  ;;  %v592_v47 = vadd.f32 %v1118_v45, %v1571_v37 }
 0x1ec   : > { %v586_v49 = vpop.f32.mrf.mxu1 }
 0x1ed   : > { %815 = vst [vmem:[%s1577_s15] sm:$0xff] %v799_v46  ;;  %v802_v50 = vmul.f32 %v737_v35, %v592_v47  ;;  %v587_v51 = vadd.f32 %v1571_v37, %v586_v49 }
 0x1ee   : > { %v1121_v53 = vpop.f32.mrf.mxu1 }
 0x1ef   : > { %818 = vst [vmem:[%s1577_s15 + $0x18] sm:$0xff] %v802_v50  ;;  %v801_v54 = vmul.f32 %v732_v33, %v587_v51  ;;  %v602_v55 = vadd.f32 %v1121_v53, %v1571_v37 }
 0x1f0   : > { %v596_v56 = vpop.f32.mrf.mxu1 }
 0x1f1   : > { %817 = vst [vmem:[%s1577_s15 + $0x10] sm:$0xff] %v801_v54  ;;  %v804_v57 = vmul.f32 %v747_v38, %v602_v55  ;;  %v597_v58 = vadd.f32 %v1571_v37, %v596_v56 }
 0x1f2   : > { %v1124_v60 = vpop.f32.mrf.mxu1 }
 0x1f3   : > { %820 = vst [vmem:[%s1577_s15 + $0x28] sm:$0xff] %v804_v57  ;;  %v803_v61 = vmul.f32 %v742_v41, %v597_v58  ;;  %v612_v62 = vadd.f32 %v1124_v60, %v1571_v37 }
 0x1f4   : > { %v606_v0 = vpop.f32.mrf.mxu1 }
 0x1f5   : > { %819 = vst [vmem:[%s1577_s15 + $0x20] sm:$0xff] %v803_v61  ;;  %v806_v1 = vmul.f32 %v757_v48, %v612_v62  ;;  %v607_v2 = vadd.f32 %v1571_v37, %v606_v0 }
 0x1f6   : > { %v1127_v3 = vpop.f32.mrf.mxu1 }
 0x1f7   : > { %822 = vst [vmem:[%s1577_s15 + $0x38] sm:$0xff] %v806_v1  ;;  %v805_v4 = vmul.f32 %v752_v52, %v607_v2  ;;  %v622_v5 = vadd.f32 %v1127_v3, %v1571_v37 }
 0x1f8   : > { %v616_v7 = vpop.f32.mrf.mxu1 }
 0x1f9   : > { %821 = vst [vmem:[%s1577_s15 + $0x30] sm:$0xff] %v805_v4  ;;  %v808_v8 = vmul.f32 %v767_v59, %v622_v5  ;;  %v617_v9 = vadd.f32 %v1571_v37, %v616_v7 }
 0x1fa   : > { %v1130_v11 = vpop.f32.mrf.mxu1 }
 0x1fb   : > { %824 = vst [vmem:[%s1577_s15 + $0x48] sm:$0xff] %v808_v8  ;;  %v807_v12 = vmul.f32 %v762_v63, %v617_v9  ;;  %v632_v13 = vadd.f32 %v1130_v11, %v1571_v37 }
 0x1fc   : > { %v626_v14 = vpop.f32.mrf.mxu1 }
 0x1fd   : > { %823 = vst [vmem:[%s1577_s15 + $0x40] sm:$0xff] %v807_v12  ;;  %v810_v15 = vmul.f32 %v777_v6, %v632_v13  ;;  %v627_v16 = vadd.f32 %v1571_v37, %v626_v14 }
 0x1fe   : > { %v1133_v18 = vpop.f32.mrf.mxu1 }
 0x1ff   : > { %826 = vst [vmem:[%s1577_s15 + $0x58] sm:$0xff] %v810_v15  ;;  %v809_v19 = vmul.f32 %v772_v10, %v627_v16  ;;  %v642_v20 = vadd.f32 %v1133_v18, %v1571_v37 }
 0x200   : > { %v636_v22 = vpop.f32.mrf.mxu1 }
 0x201   : > { %825 = vst [vmem:[%s1577_s15 + $0x50] sm:$0xff] %v809_v19  ;;  %v812_v23 = vmul.f32 %v787_v17, %v642_v20  ;;  %v637_v24 = vadd.f32 %v1571_v37, %v636_v22 }
 0x202   : > { %v1136_v25 = vpop.f32.mrf.mxu1 }
 0x203   : > { %828 = vst [vmem:[%s1577_s15 + $0x68] sm:$0xff] %v812_v23  ;;  %v811_v26 = vmul.f32 %v782_v21, %v637_v24  ;;  %v652_v27 = vadd.f32 %v1136_v25, %v1571_v37 }
 0x204   : > { %v646_v29 = vpop.f32.mrf.mxu1 }
 0x205   : > { %827 = vst [vmem:[%s1577_s15 + $0x60] sm:$0xff] %v811_v26  ;;  %v814_v30 = vmul.f32 %v797_v28, %v652_v27  ;;  %v647_v31 = vadd.f32 %v1571_v37, %v646_v29 }
 0x207   : > { %830 = vst [vmem:[%s1577_s15 + $0x78] sm:$0xff] %v814_v30  ;;  %v813_v33 = vmul.f32 %v792_v32, %v647_v31 }
 0x209   : > { %829 = vst [vmem:[%s1577_s15 + $0x70] sm:$0xff] %v813_v33 }
 0x20a   : > { %1333 = shalt.err (!%p1330_p3)
}
 0x20b   : > { %s1334_s9 = scalar_lea.hbm %s1612_s26, 2048  ;;  %s1338_s12 = scalar_lea.hbm %s1665_s5, 4096 }
 0x20c   : > { %p1335_p2 = scmp.ne.s32.totalorder %s1612_s26, %s1334_s9  ;;  %p1339_p7 = scmp.lt.s32.totalorder %s1612_s26, %s1665_s5 }
 0x20d   : > { %p1340_p6 = scmp.lt.s32.totalorder %s1338_s12, %s1334_s9 }
 0x20e   : > { %p1336_p4 = pnand %p1335_p2, %p1466_p5 }
 0x20f   : > { %p1341_p9 = por %p1340_p6, %p1339_p7 }
 0x210   : > { %p1337_p13 = pneg %p1336_p4 }
 0x212   : > { %p1342_p10 = pnand %p1341_p9, %p1337_p13 }
 0x214   : > { %1345 = shalt.err (!%p1342_p10)
}
 0x215   : > { %s1396_s15 = smov 128   ;;  %s1397_s16 = smov 8  }
 0x216   : > { %1145 = dma.vmem_to_hbm [thread:$0]  (%p1466_p5), %s1614_s17, 2048, %s1612_s26, %s1620_s22, %s1396_s15, %s1396_s15, %s1397_s16  }
 0x217 PF: > { %p1162_p12 = scmp.ge.s32.totalorder %s1388_s21, 2  ;;  %s860_s23 = sand.u32 1, %s1376_s18  }
 0x218   : > { %p1675_p8 = scmp.ne.s32.totalorder %s1668_s29, 0  ;;  %s861_s25 = scalar_lea.sflag [#allocation4], %s860_s23 }
 0x21a   : > { %p1155_p11 = pnand %p1162_p12, %p1675_p8 }
 0x21c   : > { %p1156_p0 = pneg %p1155_p11 }
 0x21e   : > { %1371 = dma.done.wait (%p1156_p0), %s861_s25, 2048  }
 0x21f   : > { %1373 = vsyncadd (%p1156_p0), %s861_s25, 4294965248  ;;  %p17_p1 = scmp.ge.s32.totalorder %s1453_s24, 4   ;;  %s1676_s18 = smov %s1380_s19 }
 0x220   : > { %s1677_s19 = smov %s1384_s20  ;;  %s1678_s20 = smov %s1464_s27 }
 0x221   : > { %s1679_s21 = smov %s1453_s24  ;;  %19 = sbr.rel (!%p17_p1) target bundleno = 5 (0x5), region = 87 }
 0x226   :  { %866 = vsyncpa [#allocation3], 1 }
 0x227   :  { %868 = vsyncpa [#allocation3 + $0x1], 1 }
 0x228   :  { %869 = vsyncpa [#allocation6], 1 }
 0x229   :  { %870 = vsyncpa [#allocation4], 1 }
 0x22a   :  { %872 = vsyncpa [#allocation4 + $0x1], 1 }

</bundles_post_ra>
